<compile_context>
chip_gen: v6e
topology: v6e:2x2x1
jax: 0.10.0
libtpu: 0.0.40
codegen_flags: <defaults>
</compile_context>

<pallas_src>
import jax
import jax.numpy as jnp
from jax.experimental import pallas as pl
from jax.experimental.pallas import tpu as pltpu

LANES = 128


def mome_kernel(mem_ref, x_ref, w_ref, b_ref, out_ref):
    # mem_ref: SMEM (2,) = [mem_w, mem_b]
    # x_ref / w_ref / b_ref / out_ref: VMEM [R, 128] lane-dense slabs of the
    # logical [E, N] arrays (x is the per-expert scalar broadcast along N).
    mw = mem_ref[0]
    mb = mem_ref[1]
    # data + memory(data) with the scalar-affine surrogate memory, folded:
    #   x + (x*mw + mb) == x*(1 + mw) + mb
    scale = x_ref[...] * (1.0 + mw) + mb
    # Per-expert Linear(1, N): out[i, :] = scale[i] * W[i, :] + b[i, :]
    # (broadcast-FMA on the VPU, full 128-lane stores).
    out_ref[...] = scale * w_ref[...] + b_ref[...]


def mome_forward(data, mem_w, mem_b, W, b):
    """data: [E, 1] f32, mem_w/mem_b: scalar f32, W/b: [E, N] f32 -> [E, N]."""
    E, N = W.shape
    assert (E * N) % LANES == 0, "lane-dense layout needs E*N % 128 == 0"
    R = (E * N) // LANES

    # Layout plumbing only (no compute hoisted out of the kernel): present the
    # kernel with lane-dense [R, 128] slabs.  The per-expert scalar input is
    # broadcast along N so it shares W/b's layout; the memory affine and the
    # expert FMA both run inside the kernel.
    x_slab = jnp.broadcast_to(data.reshape(E, 1), (E, N)).reshape(R, LANES)
    w_slab = W.reshape(R, LANES)
    b_slab = b.reshape(R, LANES)
    mem_params = jnp.stack(
        [jnp.asarray(mem_w, jnp.float32).reshape(()),
         jnp.asarray(mem_b, jnp.float32).reshape(())])           # (2,)

    out_slab = pl.pallas_call(
        mome_kernel,
        out_shape=jax.ShapeDtypeStruct((R, LANES), jnp.float32),
        # No grid: single invocation, whole arrays resident in VMEM/SMEM,
        # no software-pipeline machinery.
        in_specs=[
            pl.BlockSpec(memory_space=pltpu.MemorySpace.SMEM),   # [mem_w, mem_b]
            pl.BlockSpec(memory_space=pltpu.MemorySpace.VMEM),   # x slab
            pl.BlockSpec(memory_space=pltpu.MemorySpace.VMEM),   # W slab
            pl.BlockSpec(memory_space=pltpu.MemorySpace.VMEM),   # b slab
        ],
        out_specs=pl.BlockSpec(memory_space=pltpu.MemorySpace.VMEM),
    )(mem_params, x_slab, w_slab, b_slab)

    return out_slab.reshape(E, N)


if __name__ == "__main__":
    # Shapes consistent with the module: num_inputs (= num_experts) = 8,
    # num_outputs = 32.  data[i] is the scalar input to expert i.
    E = 8    # num_inputs / num_experts
    N = 32   # num_outputs

    key = jax.random.PRNGKey(0)
    k_data, k_w, k_b, k_mw, k_mb = jax.random.split(key, 5)

    data = jax.random.normal(k_data, (E, 1), dtype=jnp.float32)
    # Each expert: nn.Linear(1, N) -> weight [N, 1], bias [N]; per-expert
    # weight columns stacked into rows of an [E, N] matrix.
    W = jax.random.normal(k_w, (E, N), dtype=jnp.float32) * 0.1
    b = jax.random.normal(k_b, (E, N), dtype=jnp.float32) * 0.1
    # Surrogate memory parameters (scalars).
    mem_w = jax.random.normal(k_mw, (), dtype=jnp.float32) * 0.1
    mem_b = jax.random.normal(k_mb, (), dtype=jnp.float32) * 0.1

    fwd = jax.jit(mome_forward)
    out = jax.block_until_ready(fwd(data, mem_w, mem_b, W, b))

    # Pure-JAX reference of the same semantics.
    x_ref = data + (data * mem_w + mem_b)
    ref = x_ref * W + b
    assert out.shape == (E, N)
    assert jnp.allclose(out, ref, atol=1e-5, rtol=1e-5)

    print("KERNEL_OK")
</pallas_src>

<mosaic_0001>
module attributes {stable_mosaic.version = 11 : i64} {
  func.func @mome_kernel(%arg0: memref<2xf32, #tpu.memory_space<smem>>, %arg1: memref<2x128xf32, #tpu.memory_space<vmem>>, %arg2: memref<2x128xf32, #tpu.memory_space<vmem>>, %arg3: memref<2x128xf32, #tpu.memory_space<vmem>>, %arg4: memref<2x128xf32, #tpu.memory_space<vmem>>) attributes {dimension_semantics = [], scalar_prefetch = 0 : i64, scratch_operands = 0 : i64, tpu.core_type = #tpu.core_type<tc>} {
    %c0 = arith.constant 0 : index
    %0 = memref.load %arg0[%c0] : memref<2xf32, #tpu.memory_space<smem>>
    %c1 = arith.constant 1 : index
    %1 = memref.load %arg0[%c1] : memref<2xf32, #tpu.memory_space<smem>>
    %c0_0 = arith.constant 0 : index
    %c0_1 = arith.constant 0 : index
    %2 = vector.load %arg1[%c0_0, %c0_1] : memref<2x128xf32, #tpu.memory_space<vmem>>, vector<2x128xf32>
    %cst = arith.constant 1.000000e+00 : f32
    %3 = arith.addf %cst, %0 : f32
    %4 = vector.broadcast %3 : f32 to vector<2x128xf32>
    %5 = arith.mulf %2, %4 : vector<2x128xf32>
    %6 = vector.broadcast %1 : f32 to vector<2x128xf32>
    %7 = arith.addf %5, %6 : vector<2x128xf32>
    %c0_2 = arith.constant 0 : index
    %c0_3 = arith.constant 0 : index
    %8 = vector.load %arg2[%c0_2, %c0_3] : memref<2x128xf32, #tpu.memory_space<vmem>>, vector<2x128xf32>
    %9 = arith.mulf %7, %8 : vector<2x128xf32>
    %c0_4 = arith.constant 0 : index
    %c0_5 = arith.constant 0 : index
    %10 = vector.load %arg3[%c0_4, %c0_5] : memref<2x128xf32, #tpu.memory_space<vmem>>, vector<2x128xf32>
    %11 = arith.addf %9, %10 : vector<2x128xf32>
    %c0_6 = arith.constant 0 : index
    %c0_7 = arith.constant 0 : index
    %12 = vector.load %arg4[%c0_6, %c0_7] : memref<2x128xf32, #tpu.memory_space<vmem>>, vector<2x128xf32>
    tpu.vector_store %arg4[%c0_6, %c0_7], %11 {strides = array<i32>} : memref<2x128xf32, #tpu.memory_space<vmem>>, vector<2x128xf32>,
    return
  }
}

</mosaic_0001>

<bundles_post_ra>
// kernel: mome_forward.1
= control target key start
LH: loop header
LB: loop body
LE: loop exit
PB: predicated region body
PF: predicated region fallthrough
CT: control target
= control target key end

     0   :  { %9 = vsyncpa [#allocation3], 0  ;;  %s105_s0 = inlined_call_operand.vmem [shape: f32[2], index: 0, kind: input, shape index: {}]   ;;  %s106_s1 = inlined_call_operand.vmem [shape: f32[2,128], index: 1, kind: input, shape index: {}]   ;;  %s107_s2 = inlined_call_operand.vmem [shape: f32[2,128], index: 2, kind: input, shape index: {}]   ;;  %s108_s3 = inlined_call_operand.vmem [shape: f32[2,128], index: 3, kind: input, shape index: {}]   ;;  %s109_s4 = inlined_call_operand.vmem [shape: f32[2,128], index: 4, kind: output, shape index: {}]  }
   0x1   :  { %s16_s17 = sshll.u32 %s105_s0, 4  ;;  %s17_s17 = int_to_ptr.vmem [resolvable:$true] %s16_s17 }
   0x2   :  { %s50_s18 = scalar_lea.vmem %s17_s17, 16  ;;  %p55_p1 = scmp.lt.s32.totalorder %s17_s17, %s17_s17 }
   0x3   :  { %p51_p0 = scmp.ne.s32.totalorder %s17_s17, %s50_s18  ;;  %p56_p2 = scmp.lt.s32.totalorder %s50_s18, %s50_s18 }
   0x5   :  { %p57_p3 = por %p56_p2, %p55_p1 }
   0x7   :  { %p58_p4 = pnand %p57_p3, %p51_p0 }
   0x9   :  { %61 = shalt.err (!%p58_p4)
}
   0xa   :  { %s64_s19 = smov [#allocation2]  }
   0xb   :  { %19 = dma.vmem_to_smem %s17_s17, 16, %s64_s19, [#allocation3]  }
   0xc   :  { %62 = dma.done.wait [#allocation3], 16  }
   0xd   :  { %63 = vsyncadd [#allocation3], 4294967280 }
   0xe   :  { %29 = sfence }
   0xf   :  { %s30_s20 = sld [smem:[#allocation2]]  ;;  %v32_v0 = vld [vmem:[%s106_s1] sm:$0x3] }
  0x10   :  { %s48_s21 = sld [smem:[#allocation2 + $0x1]]  ;;  %v38_v4 = vld [vmem:[%s107_s2] sm:$0x3] }
  0x11   :  { %v40_v6 = vld [vmem:[%s108_s3] sm:$0x3] }
  0x15   :  { %s33_s0 = sadd.f32 1.0, %s30_s20 }
  0x16   :  { %v36_v2 = vstv %s48_s21 }
  0x17   :  { %v34_v1 = vstv %s33_s0 }
  0x18   :  { %v35_v3 = vmul.f32 %v34_v1, %v32_v0 }
  0x1a   :  { %v37_v5 = vadd.f32 %v36_v2, %v35_v3 }
  0x1c   :  { %v39_v7 = vmul.f32 %v38_v4, %v37_v5 }
  0x1e   :  { %v41_v8 = vadd.f32 %v40_v6, %v39_v7 }
  0x20   :  { %42 = vst [vmem:[%s109_s4] sm:$0x3] %v41_v8 }
  0x21   :  { %47 = vsyncpa [#allocation3], 1 }

</bundles_post_ra>
